<compile_context>
chip_gen: v5e
topology: v5e:2x2
jax: 0.10.0
libtpu: 0.0.40
codegen_flags: <defaults>
</compile_context>

<pallas_src>
import functools
import math

import jax
import jax.numpy as jnp
from jax.experimental import pallas as pl
from jax.experimental.pallas import tpu as pltpu


def make_sinusoidal_pe(d_model: int, max_len: int = 5000) -> jnp.ndarray:
    """Replicates the PyTorch __init__: returns pe of shape (max_len, 1, d_model).

    Like the PyTorch reference, this requires an even d_model (the reference
    implementation raises a shape error for odd d_model).
    """
    assert d_model % 2 == 0, "PositionalEncoding requires an even d_model"
    position = jnp.arange(0, max_len, dtype=jnp.float32)[:, None]            # (max_len, 1)
    div_term = jnp.exp(
        jnp.arange(0, d_model, 2, dtype=jnp.float32) * (-math.log(10000.0) / d_model)
    )                                                                         # (d_model/2,)
    angles = position * div_term                                              # (max_len, d/2)
    pe = jnp.zeros((max_len, d_model), dtype=jnp.float32)
    pe = pe.at[:, 0::2].set(jnp.sin(angles))
    pe = pe.at[:, 1::2].set(jnp.cos(angles))
    return pe[:, None, :]                                                     # (max_len, 1, d_model)


def _pe_add_kernel(x_ref, pe_ref, o_ref, *, batch: int):
    # x_ref: (ts, B*D) lane-dense tile of the input
    # pe_ref: (ts, D)  tile of the positional-encoding table
    # Broadcast pe across the B replicas that live along the lane dimension,
    # then do the elementwise add (pure VPU streaming work).
    pe_tile = pe_ref[...]
    pe_bcast = jnp.tile(pe_tile, (1, batch)) if batch > 1 else pe_tile        # (ts, B*D)
    o_ref[...] = (x_ref[...] + pe_bcast).astype(o_ref.dtype)


def positional_encoding_forward(
    x: jnp.ndarray,
    pe: jnp.ndarray,
    *,
    target_block_bytes: int = 2 * 1024 * 1024,
) -> jnp.ndarray:
    """x: (S, B, D);  pe: (max_len, 1, D).  Returns x + pe[:S] in x.dtype."""
    S, B, D = x.shape
    max_len = pe.shape[0]
    assert S <= max_len

    # Flatten (B, D) -> B*D: free for a row-major-contiguous array; makes the
    # trailing block dim lane-dense for the load/store path.
    x2d = x.reshape(S, B * D)
    # Cast pe to the input dtype so the kernel's add stays in x.dtype.
    pe2d = pe.reshape(max_len, D)[:S].astype(x.dtype)                         # (S, D)

    # Sequence tile: ~target_block_bytes per x block, rounded down to a
    # multiple of 8 rows (sublane tiling) and clipped to S (the full-dim
    # exemption covers the ts == S case).
    row_bytes = B * D * x.dtype.itemsize
    ts = max(8, (target_block_bytes // max(row_bytes, 1)) // 8 * 8)
    ts = min(ts, S)
    num_tiles = pl.cdiv(S, ts)

    kernel = functools.partial(_pe_add_kernel, batch=B)

    out2d = pl.pallas_call(
        kernel,
        out_shape=jax.ShapeDtypeStruct((S, B * D), x.dtype),
        grid=(num_tiles,),
        in_specs=[
            pl.BlockSpec((ts, B * D), lambda i: (i, 0)),   # x tile (lane-dense)
            pl.BlockSpec((ts, D), lambda i: (i, 0)),       # pe tile (1/B of x traffic)
        ],
        out_specs=pl.BlockSpec((ts, B * D), lambda i: (i, 0)),
        compiler_params=pltpu.CompilerParams(
            # Independent seq tiles -> shard across both TensorCores on v7x;
            # neutral on single-TC v5e/v6e.
            dimension_semantics=("parallel",),
        ),
    )(x2d, pe2d)

    return out2d.reshape(S, B, D)


if __name__ == "__main__":
    # Small shapes consistent with the module's forward: (seq, batch, d_model)
    seq_len, batch, d_model = 16, 2, 32
    max_len = 64

    key = jax.random.PRNGKey(0)
    x = jax.random.normal(key, (seq_len, batch, d_model), dtype=jnp.float32)
    pe = make_sinusoidal_pe(d_model, max_len=max_len)

    # Plain-JAX reference (same semantics as the torch forward).
    ref = x + pe[:seq_len]

    # 1) Default tiling (whole sequence fits in one block at these sizes).
    out = jax.block_until_ready(positional_encoding_forward(x, pe))
    assert out.shape == (seq_len, batch, d_model)
    assert jnp.allclose(out, ref, atol=1e-6), "mismatch vs reference (single tile)"

    # 2) Force a multi-step grid (two 8-row seq tiles) to exercise the
    #    pipelined / megacore-parallel path.
    out_tiled = jax.block_until_ready(
        positional_encoding_forward(x, pe, target_block_bytes=1024)
    )
    assert jnp.allclose(out_tiled, ref, atol=1e-6), "mismatch vs reference (tiled)"

    print("KERNEL_OK")
</pallas_src>

<mosaic_0001>
module attributes {stable_mosaic.version = 11 : i64} {
  func.func @_pe_add_kernel(%arg0: i32, %arg1: memref<16x64xf32, #tpu.memory_space<vmem>>, %arg2: memref<16x32xf32, #tpu.memory_space<vmem>>, %arg3: memref<16x64xf32, #tpu.memory_space<vmem>>) attributes {dimension_semantics = [#tpu.dimension_semantics<parallel>], iteration_bounds = array<i64: 1>, scalar_prefetch = 0 : i64, scratch_operands = 0 : i64, tpu.core_type = #tpu.core_type<tc>, window_params = [{transform_indices = @transform_0, window_bounds = array<i64: 16, 64>}, {transform_indices = @transform_1, window_bounds = array<i64: 16, 32>}, {transform_indices = @transform_2, window_bounds = array<i64: 16, 64>}]} {
    %c0 = arith.constant 0 : index
    %c0_0 = arith.constant 0 : index
    %0 = vector.load %arg2[%c0, %c0_0] : memref<16x32xf32, #tpu.memory_space<vmem>>, vector<16x32xf32>
    %1 = tpu.concatenate %0, %0 in 1 : vector<16x32xf32>, vector<16x32xf32> -> vector<16x64xf32>
    %c0_1 = arith.constant 0 : index
    %c0_2 = arith.constant 0 : index
    %2 = vector.load %arg1[%c0_1, %c0_2] : memref<16x64xf32, #tpu.memory_space<vmem>>, vector<16x64xf32>
    %3 = arith.addf %2, %1 : vector<16x64xf32>
    %c0_3 = arith.constant 0 : index
    %c0_4 = arith.constant 0 : index
    %4 = vector.load %arg3[%c0_3, %c0_4] : memref<16x64xf32, #tpu.memory_space<vmem>>, vector<16x64xf32>
    tpu.vector_store %arg3[%c0_3, %c0_4], %3 {strides = array<i32>} : memref<16x64xf32, #tpu.memory_space<vmem>>, vector<16x64xf32>,
    return
  }
  func.func @transform_0(%arg0: i32) -> (i32, i32) {
    %c0_i32 = arith.constant 0 : i32
    %c0_i32_0 = arith.constant 0 : i32
    return %arg0, %c0_i32 : i32, i32
  }
  func.func @transform_1(%arg0: i32) -> (i32, i32) {
    %c0_i32 = arith.constant 0 : i32
    %c0_i32_0 = arith.constant 0 : i32
    return %arg0, %c0_i32 : i32, i32
  }
  func.func @transform_2(%arg0: i32) -> (i32, i32) {
    %c0_i32 = arith.constant 0 : i32
    %c0_i32_0 = arith.constant 0 : i32
    return %arg0, %c0_i32 : i32, i32
  }
}

</mosaic_0001>

<bundles_post_ra>
// kernel: tpu_custom_call.1
= control target key start
LH: loop header
LB: loop body
LE: loop exit
PB: predicated region body
PF: predicated region fallthrough
CT: control target
= control target key end

     0   :  { %7 = vsyncpa [#allocation3], 0  ;;  %s207_s0 = inlined_call_operand.hbm [shape: f32[16,64], index: 0, kind: input, shape index: {}]   ;;  %s208_s1 = inlined_call_operand.hbm [shape: f32[16,32], index: 1, kind: input, shape index: {}]   ;;  %s209_s2 = inlined_call_operand.hbm [shape: f32[16,64], index: 2, kind: output, shape index: {}]  }
   0x1   :  { %8 = vsyncpa [#allocation6], 0 }
   0x2   :  { %9 = vsyncpa [#allocation4], 0  ;;  %s14_s11 = sshll.u32 %s207_s0, 4  ;;  %s168_s12 = smov [#allocation2]   ;;  %s15_s11 = int_to_ptr.hbm [resolvable:$true] %s14_s11 }
   0x3   :  { %s16_s13 = sshll.u32 %s168_s12, 4  ;;  %s27_s16 = sshll.u32 %s208_s1, 4  ;;  %s17_s13 = int_to_ptr.vmem [resolvable:$true] %s16_s13  ;;  %s28_s16 = int_to_ptr.hbm [resolvable:$true] %s27_s16 }
   0x4   :  { %s169_s17 = smov 128   ;;  %s170_s18 = smov 8  }
   0x5   :  { %22 = dma.hbm_to_vmem [thread:$0]  %s15_s11, 256, %s17_s13, [#allocation3], %s169_s17, %s169_s17, %s170_s18  }
   0x6   :  { %s171_s19 = smov [#allocation5]  }
   0x7   :  { %s29_s20 = sshll.u32 %s171_s19, 4  ;;  %s30_s20 = int_to_ptr.vmem [resolvable:$true] %s29_s20 }
   0x8   :  { %35 = dma.hbm_to_vmem [thread:$0]  %s28_s16, 256, %s30_s20, [#allocation6], %s169_s17, %s169_s17, %s170_s18  }
   0x9   :  { %162 = dma.done.wait [#allocation3], 256  }
   0xa   :  { %163 = vsyncadd [#allocation3], 4294967040 }
   0xb   :  { %164 = dma.done.wait [#allocation6], 256  }
   0xc   :  { %165 = vsyncadd [#allocation6], 4294967040  ;;  %v44_v0 = vld [vmem:[#allocation5] sm:$0xff]  ;;  %s172_s0 = smov 32   ;;  %v45_v1 = vld [vmem:[#allocation5 + $0x8] sm:$0xff]  ;;  %vm54_vm0 = vcmask 261120  }
   0xd   :  { %48 = vrot.lane.b32.xlu0 %v44_v0, %s172_s0  ;;  %v57_v2 = vld [vmem:[#allocation2] sm:$0xff]  ;;  %vm61_vm1 = vcmask 523264   ;;  %v58_v6 = vld [vmem:[#allocation2 + $0x8] sm:$0xff]  ;;  %s173_s1 = smov [#allocation7]   ;;  %s70_s24 = sshll.u32 %s209_s2, 4  ;;  %s71_s24 = int_to_ptr.hbm [resolvable:$true] %s70_s24 }
   0xe   :  { %s68_s21 = sshll.u32 %s173_s1, 4  ;;  %s69_s21 = int_to_ptr.vmem [resolvable:$true] %s68_s21 }
  0x15   :  { %50 = vrot.lane.b32.xlu0 %v45_v1, %s172_s0 }
  0x7f   :  { %v49_v3 = vpop.permute.xlu0 %48 }
  0x80   :  { %v55_v4 = vsel %vm54_vm0, %v44_v0, %v49_v3 }
  0x81   :  { %v59_v5 = vadd.f32 %v57_v2, %v55_v4 }
  0x83   :  { %62 = vst.msk [vmem:[#allocation7] sm:$0xff] %vm61_vm1, %v59_v5 }
  0x87   :  { %v51_v7 = vpop.permute.xlu0 %50 }
  0x88   :  { %v56_v8 = vsel %vm54_vm0, %v45_v1, %v51_v7 }
  0x89   :  { %v60_v9 = vadd.f32 %v58_v6, %v56_v8 }
  0x8b   :  { %63 = vst.msk [vmem:[#allocation7 + $0x8] sm:$0xff] %vm61_vm1, %v60_v9 }
  0x8c   :  { %76 = dma.vmem_to_hbm [thread:$0]  %s69_s21, 256, %s71_s24, [#allocation4], %s169_s17, %s169_s17, %s170_s18  }
  0x8d   :  { %166 = dma.done.wait [#allocation4], 256  }
  0x8e   :  { %167 = vsyncadd [#allocation4], 4294967040 }
  0x8f   :  { %81 = vsyncpa [#allocation3], 1 }
  0x90   :  { %82 = vsyncpa [#allocation6], 1 }
  0x91   :  { %83 = vsyncpa [#allocation4], 1 }

</bundles_post_ra>
